<compile_context>
chip_gen: v5e
topology: v5e:2x2
jax: 0.10.0
libtpu: 0.0.40
codegen_flags: <defaults>
</compile_context>

<pallas_src>
import jax
import jax.numpy as jnp
from jax.experimental import pallas as pl
from jax.experimental.pallas import tpu as pltpu


def _fused_kernel(gene_ref, ci_ref, wci_ref, packed_ref, out_ref):
    f32 = jnp.float32
    gene = gene_ref[...]                     # [B, G]   f32
    ci = ci_ref[...]                         # [B, C+P] bf16 (clinical | flat image)
    B = gene.shape[0]
    G = gene.shape[1]

    packed = packed_ref[...]                 # [8, 128] f32 constants tile
    b_ci = packed[0:1, :]                    # [1,128]  = [bc | bimg]
    b_gene = packed[1:2, 0:64]               # [1,64]   = convb@W_vo + bv@Wo^T + bo
    wf_ci = packed[2:3, :]                   # [1,128]  = [wf_clin | wf_img]
    wf_gene = packed[3:4, 0:64]              # [1,64]
    t0 = packed[4:5, 0:64]                   # [1,64]   conv taps folded thru 1/G and W_vo
    t1 = packed[5:6, 0:64]
    t2 = packed[6:7, 0:64]
    bf = packed[7:8, 0:1]                    # [1,1]    final_fc bias

    # --- clinical fc + (backbone->fc) image head as ONE block-diag matmul ---
    ci_raw = jnp.dot(ci, wci_ref[...], preferred_element_type=f32) + b_ci   # [B,128]
    lane = jax.lax.broadcasted_iota(jnp.int32, (1, 128), 1)
    # ReLU only on the clinical lanes (0:64); image fc has no activation.
    ci_out = jnp.where(lane < 64, jnp.maximum(ci_raw, 0.0), ci_raw)         # [B,128]

    # --- gene branch: conv+avgpool+MHA(seq_len=1) fully folded to 3 rank-1 updates ---
    s_all = jnp.sum(gene, axis=1, keepdims=True)      # sum_i x[i]     (tap k=1)
    s_m1 = s_all - gene[:, G - 1:G]                   # sum_i x[i-1]   (tap k=0)
    s_p1 = s_all - gene[:, 0:1]                       # sum_i x[i+1]   (tap k=2)
    gene_attn = s_m1 * t0 + s_all * t1 + s_p1 * t2 + b_gene                 # [B,64]

    # --- final_fc as VPU multiply + lane reduce (no N=1 MXU pass, no (B,1) masked store) ---
    final = (jnp.sum(ci_out * wf_ci, axis=-1, keepdims=True)
             + jnp.sum(gene_attn * wf_gene, axis=-1, keepdims=True)
             + bf)                                                          # [B,1]

    # --- single lane-dense (B,256) output slab, two 128-aligned unmasked stores ---
    out_ref[:, 0:128] = ci_out
    out_ref[:, 128:256] = jnp.concatenate(
        [gene_attn, jnp.broadcast_to(final, (B, 64))], axis=1)


def init_params(key, clinical_size, gene_size, img_feat_size, img_flat_size):
    ks = jax.random.split(key, 12)

    def normal(k, shape, scale=0.02):
        return (scale * jax.random.normal(k, shape)).astype(jnp.float32)

    # Shapes follow the PyTorch module __init__ (weights stored [out, in]).
    wc = normal(ks[0], (64, clinical_size))            # clinical_fc
    bc = normal(ks[1], (64,))
    convw = normal(ks[2], (64, 1, 3))                  # Conv1d(1, 64, 3)
    convb = normal(ks[3], (64,))
    wimg = normal(ks[4], (64, img_feat_size))          # ImageNet.fc
    bimg = normal(ks[5], (64,))
    in_proj_w = normal(ks[6], (3 * 64, 64))            # MHA in_proj
    in_proj_b = normal(ks[7], (3 * 64,))
    wo = normal(ks[8], (64, 64))                       # MHA out_proj
    bo = jnp.zeros((64,), jnp.float32)
    wf = normal(ks[9], (1, 64 * 3))                    # final_fc
    bf = jnp.zeros((1,), jnp.float32)
    backbone_w = normal(ks[10], (img_flat_size, img_feat_size))

    # ---- host-side exact folding (linear algebra only, no semantic change) ----
    # MHA(seq_len=1): softmax over a single key == 1  =>  out = out_proj(v_proj(x)).
    wv_t = in_proj_w[128:192, :].T                     # [64,64]
    bv = in_proj_b[128:192]
    wo_t = wo.T
    w_vo = wv_t @ wo_t                                 # [64,64]
    b_vo = bv @ wo_t + bo                              # [64]

    # Conv1d + AdaptiveAvgPool1d folded through 1/G and W_vo.
    taps = convw[:, 0, :]                              # [64, 3] (out_ch, tap)
    t = (taps.T @ w_vo) / float(gene_size)             # [3, 64]
    b_gene = convb @ w_vo + b_vo                       # [64]

    # Fold the (stand-in, linear) image backbone directly into the fc head.
    w_img_folded = backbone_w @ wimg.T                 # [P, 64]

    # Block-diagonal clinical + image weight: [C+P, 128].
    C, P = clinical_size, img_flat_size
    w_ci = jnp.zeros((C + P, 128), jnp.float32)
    w_ci = w_ci.at[:C, 0:64].set(wc.T)
    w_ci = w_ci.at[C:, 64:128].set(w_img_folded)
    b_ci = jnp.concatenate([bc, bimg])                 # [128]

    # final_fc weight split to match the [clin | img | gene] slab layout.
    wf_clin = wf[0, 0:64]
    wf_gene = wf[0, 64:128]
    wf_img = wf[0, 128:192]
    wf_ci = jnp.concatenate([wf_clin, wf_img])         # [128]

    # Pack all small per-lane constants + final bias into ONE (8,128) f32 tile.
    packed = jnp.zeros((8, 128), jnp.float32)
    packed = packed.at[0, :].set(b_ci)
    packed = packed.at[1, 0:64].set(b_gene)
    packed = packed.at[2, :].set(wf_ci)
    packed = packed.at[3, 0:64].set(wf_gene)
    packed = packed.at[4, 0:64].set(t[0])
    packed = packed.at[5, 0:64].set(t[1])
    packed = packed.at[6, 0:64].set(t[2])
    packed = packed.at[7, 0].set(bf[0])

    return dict(
        w_ci=w_ci.astype(jnp.bfloat16),                # MXU operand -> bf16
        packed=packed,                                 # f32 (VPU path)
    )


def simplified_multimodal_forward(params, clinical, gene, image):
    B = clinical.shape[0]
    # TODO(synk): the pretrained timm 'MahmoodLab/uni' ViT backbone cannot be
    # reproduced in-script; it is replaced by a deterministic linear feature
    # extractor, which is folded host-side into the image fc head so the whole
    # forward is a single pallas_call.
    img_flat = image.reshape(B, -1)

    # Concatenated activation slab for the block-diagonal fc (bf16 MXU operand).
    ci = jnp.concatenate([clinical, img_flat], axis=1).astype(jnp.bfloat16)

    vmem = pl.BlockSpec(memory_space=pltpu.MemorySpace.VMEM)

    # TODO(synk): if batch size ever scales beyond toy sizes, add a batch grid
    # (grid=(pl.cdiv(B, TB),), dimension_semantics=("parallel",)) to shard
    # across v7x's two TensorCores and pipeline the batch-sliced DMAs.
    slab = pl.pallas_call(
        _fused_kernel,
        out_shape=jax.ShapeDtypeStruct((B, 256), jnp.float32),
        in_specs=[vmem, vmem, vmem, vmem],
        out_specs=vmem,
        compiler_params=pltpu.CompilerParams(vmem_limit_bytes=32 * 1024 * 1024),
    )(gene, ci, params["w_ci"], params["packed"])

    clin_out = slab[:, 0:64]
    img_out = slab[:, 64:128]
    gene_out = slab[:, 128:192]
    output = slab[:, 192:193]
    return output, (clin_out, gene_out, img_out)


if __name__ == "__main__":
    key = jax.random.PRNGKey(0)
    B, C, G, H, W, F = 2, 4, 16, 16, 16, 32
    k_clin, k_gene, k_img, k_par = jax.random.split(key, 4)

    clinical = jax.random.normal(k_clin, (B, C), jnp.float32)
    gene = jax.random.normal(k_gene, (B, G), jnp.float32)
    image = jax.random.normal(k_img, (B, 3, H, W), jnp.float32)   # NCHW

    params = init_params(k_par, clinical_size=C, gene_size=G,
                         img_feat_size=F, img_flat_size=3 * H * W)

    fwd = jax.jit(simplified_multimodal_forward)
    output, (clin_out, gene_out, img_out) = fwd(params, clinical, gene, image)
    jax.block_until_ready((output, clin_out, gene_out, img_out))

    assert output.shape == (B, 1)
    assert clin_out.shape == (B, 64)
    assert gene_out.shape == (B, 64)
    assert img_out.shape == (B, 64)
    print("KERNEL_OK")
</pallas_src>

<mosaic_0001>
module attributes {stable_mosaic.version = 11 : i64} {
  func.func @_fused_kernel(%arg0: memref<2x16xf32, #tpu.memory_space<vmem>>, %arg1: memref<2x772xbf16, #tpu.memory_space<vmem>>, %arg2: memref<772x128xbf16, #tpu.memory_space<vmem>>, %arg3: memref<8x128xf32, #tpu.memory_space<vmem>>, %arg4: memref<2x256xf32, #tpu.memory_space<vmem>>) attributes {dimension_semantics = [], scalar_prefetch = 0 : i64, scratch_operands = 0 : i64, tpu.core_type = #tpu.core_type<tc>} {
    %c0 = arith.constant 0 : index
    %c0_0 = arith.constant 0 : index
    %0 = vector.load %arg0[%c0, %c0_0] : memref<2x16xf32, #tpu.memory_space<vmem>>, vector<2x16xf32>
    %c0_1 = arith.constant 0 : index
    %c0_2 = arith.constant 0 : index
    %1 = vector.load %arg1[%c0_1, %c0_2] : memref<2x772xbf16, #tpu.memory_space<vmem>>, vector<2x772xbf16>
    %c0_3 = arith.constant 0 : index
    %c0_4 = arith.constant 0 : index
    %2 = vector.load %arg3[%c0_3, %c0_4] : memref<8x128xf32, #tpu.memory_space<vmem>>, vector<8x128xf32>
    %3 = vector.extract_strided_slice %2 {offsets = [0, 0], sizes = [1, 128], strides = [1, 1]} : vector<8x128xf32> to vector<1x128xf32>
    %4 = vector.extract_strided_slice %2 {offsets = [1, 0], sizes = [1, 64], strides = [1, 1]} : vector<8x128xf32> to vector<1x64xf32>
    %5 = vector.extract_strided_slice %2 {offsets = [2, 0], sizes = [1, 128], strides = [1, 1]} : vector<8x128xf32> to vector<1x128xf32>
    %6 = vector.extract_strided_slice %2 {offsets = [3, 0], sizes = [1, 64], strides = [1, 1]} : vector<8x128xf32> to vector<1x64xf32>
    %7 = vector.extract_strided_slice %2 {offsets = [4, 0], sizes = [1, 64], strides = [1, 1]} : vector<8x128xf32> to vector<1x64xf32>
    %8 = vector.extract_strided_slice %2 {offsets = [5, 0], sizes = [1, 64], strides = [1, 1]} : vector<8x128xf32> to vector<1x64xf32>
    %9 = vector.extract_strided_slice %2 {offsets = [6, 0], sizes = [1, 64], strides = [1, 1]} : vector<8x128xf32> to vector<1x64xf32>
    %10 = vector.extract_strided_slice %2 {offsets = [7, 0], sizes = [1, 1], strides = [1, 1]} : vector<8x128xf32> to vector<1x1xf32>
    %c0_5 = arith.constant 0 : index
    %c0_6 = arith.constant 0 : index
    %11 = vector.load %arg2[%c0_5, %c0_6] : memref<772x128xbf16, #tpu.memory_space<vmem>>, vector<772x128xbf16>
    %cst = arith.constant dense<0.000000e+00> : vector<2x128xf32>
    %12 = tpu.matmul %1, %11, %cst {dimension_numbers = #tpu.dot_dimension_numbers<[1], [0], [0], [1], [0, 0, 1, 1], [], []>} : vector<2x772xbf16>, vector<772x128xbf16>, vector<2x128xf32> -> vector<2x128xf32>
    %13 = vector.broadcast %3 : vector<1x128xf32> to vector<2x128xf32>
    %14 = arith.addf %12, %13 : vector<2x128xf32>
    %15 = tpu.iota {dimensions = array<i32: 1>} : vector<1x128xi32>
    %c64_i32 = arith.constant 64 : i32
    %16 = vector.broadcast %c64_i32 : i32 to vector<1x128xi32>
    %17 = arith.cmpi slt, %15, %16 : vector<1x128xi32>
    %cst_7 = arith.constant 0.000000e+00 : f32
    %18 = vector.broadcast %cst_7 : f32 to vector<2x128xf32>
    %19 = arith.maximumf %14, %18 : vector<2x128xf32>
    %20 = vector.shape_cast %17 : vector<1x128xi1> to vector<1x128xi1>
    %21 = vector.broadcast %20 : vector<1x128xi1> to vector<2x128xi1>
    %22 = arith.select %21, %19, %14 : vector<2x128xi1>, vector<2x128xf32>
    %cst_8 = arith.constant dense<0.000000e+00> : vector<2xf32>
    %23 = vector.multi_reduction <add>, %0, %cst_8 [1] : vector<2x16xf32> to vector<2xf32>
    %24 = vector.shape_cast %23 : vector<2xf32> to vector<2x1xf32>
    %25 = vector.extract_strided_slice %0 {offsets = [0, 15], sizes = [2, 1], strides = [1, 1]} : vector<2x16xf32> to vector<2x1xf32>
    %26 = arith.subf %24, %25 : vector<2x1xf32>
    %27 = vector.extract_strided_slice %0 {offsets = [0, 0], sizes = [2, 1], strides = [1, 1]} : vector<2x16xf32> to vector<2x1xf32>
    %28 = arith.subf %24, %27 : vector<2x1xf32>
    %29 = vector.broadcast %26 : vector<2x1xf32> to vector<2x64xf32>
    %30 = vector.broadcast %7 : vector<1x64xf32> to vector<2x64xf32>
    %31 = arith.mulf %29, %30 : vector<2x64xf32>
    %32 = vector.broadcast %24 : vector<2x1xf32> to vector<2x64xf32>
    %33 = vector.broadcast %8 : vector<1x64xf32> to vector<2x64xf32>
    %34 = arith.mulf %32, %33 : vector<2x64xf32>
    %35 = arith.addf %31, %34 : vector<2x64xf32>
    %36 = vector.broadcast %28 : vector<2x1xf32> to vector<2x64xf32>
    %37 = vector.broadcast %9 : vector<1x64xf32> to vector<2x64xf32>
    %38 = arith.mulf %36, %37 : vector<2x64xf32>
    %39 = arith.addf %35, %38 : vector<2x64xf32>
    %40 = vector.broadcast %4 : vector<1x64xf32> to vector<2x64xf32>
    %41 = arith.addf %39, %40 : vector<2x64xf32>
    %42 = vector.broadcast %5 : vector<1x128xf32> to vector<2x128xf32>
    %43 = arith.mulf %22, %42 : vector<2x128xf32>
    %cst_9 = arith.constant dense<0.000000e+00> : vector<2xf32>
    %44 = vector.multi_reduction <add>, %43, %cst_9 [1] : vector<2x128xf32> to vector<2xf32>
    %45 = vector.shape_cast %44 : vector<2xf32> to vector<2x1xf32>
    %46 = vector.broadcast %6 : vector<1x64xf32> to vector<2x64xf32>
    %47 = arith.mulf %41, %46 : vector<2x64xf32>
    %cst_10 = arith.constant dense<0.000000e+00> : vector<2xf32>
    %48 = vector.multi_reduction <add>, %47, %cst_10 [1] : vector<2x64xf32> to vector<2xf32>
    %49 = vector.shape_cast %48 : vector<2xf32> to vector<2x1xf32>
    %50 = arith.addf %45, %49 : vector<2x1xf32>
    %51 = vector.broadcast %10 : vector<1x1xf32> to vector<2x1xf32>
    %52 = arith.addf %50, %51 : vector<2x1xf32>
    %c0_11 = arith.constant 0 : index
    %c0_12 = arith.constant 0 : index
    %53 = vector.load %arg4[%c0_11, %c0_12] : memref<2x256xf32, #tpu.memory_space<vmem>>, vector<2x128xf32>
    tpu.vector_store %arg4[%c0_11, %c0_12], %22 {strides = array<i32>} : memref<2x256xf32, #tpu.memory_space<vmem>>, vector<2x128xf32>,
    %54 = vector.shape_cast %52 : vector<2x1xf32> to vector<2x1xf32>
    %55 = vector.broadcast %54 : vector<2x1xf32> to vector<2x64xf32>
    %56 = tpu.concatenate %41, %55 in 1 : vector<2x64xf32>, vector<2x64xf32> -> vector<2x128xf32>
    %c0_13 = arith.constant 0 : index
    %c128 = arith.constant 128 : index
    %57 = vector.load %arg4[%c0_13, %c128] : memref<2x256xf32, #tpu.memory_space<vmem>>, vector<2x128xf32>
    tpu.vector_store %arg4[%c0_13, %c128], %56 {strides = array<i32>} : memref<2x256xf32, #tpu.memory_space<vmem>>, vector<2x128xf32>,
    return
  }
}

</mosaic_0001>

<bundles_post_ra>
// kernel: simplified_multimodal_forward.1
= control target key start
LH: loop header
LB: loop body
LE: loop exit
PB: predicated region body
PF: predicated region fallthrough
CT: control target
= control target key end

     0   :  { %9 = vsyncpa [#allocation3], 0  ;;  %s874_s18 = smov [#allocation2]   ;;  %s875_s20 = smov 64   ;;  %s928_s0 = inlined_call_operand.vmem [shape: f32[2,16], index: 0, kind: input, shape index: {}]   ;;  %s929_s1 = inlined_call_operand.vmem [shape: bf16[2,772], index: 1, kind: input, shape index: {}]   ;;  %s930_s2 = inlined_call_operand.hbm [shape: bf16[772,128], index: 2, kind: input, shape index: {}]   ;;  %s931_s3 = inlined_call_operand.vmem [shape: f32[8,128], index: 3, kind: input, shape index: {}]   ;;  %s932_s4 = inlined_call_operand.vmem [shape: f32[2,256], index: 4, kind: output, shape index: {}]  }
   0x1   :  { %s18_s17 = sshll.u32 %s930_s2, 4  ;;  %s20_s19 = sshll.u32 %s874_s18, 4  ;;  %s19_s17 = int_to_ptr.hbm [resolvable:$true] %s18_s17  ;;  %s21_s19 = int_to_ptr.vmem [resolvable:$true] %s20_s19 }
   0x2   :  { %s876_s21 = smov 4  }
   0x3   :  { %26 = dma.hbm_to_vmem [thread:$0]  %s19_s17, 6208, %s21_s19, [#allocation3], %s875_s20, %s875_s20, %s876_s21  }
   0x4   :  { %872 = dma.done.wait [#allocation3], 6208  }
   0x5   :  { %873 = vsyncadd [#allocation3], 4294961088  ;;  %vm546_vm0 = vcmask 123904   ;;  %v910_v0 = vld [vmem:[%s928_s0] sm:$0x3]  ;;  %v797_v4 = vld [vmem:[#allocation2 + $0x30] sm:$0xff] }
   0x6   :  { %v798_v1 = vld [vmem:[#allocation2 + $0x38] sm:$0xff]  ;;  %v547_v3 = vsel %vm546_vm0, %v910_v0, 0.0  ;;  %v805_v6 = vld [vmem:[#allocation2 + $0x70] sm:$0xff]  ;;  %v796_v9 = vld [vmem:[#allocation2 + $0x28] sm:$0xff]  ;;  %vm444_vm1 = vcmask 1041408   ;;  %vm441_vm2 = vcmask 31744  }
   0x7   :  { %v806_v2 = vld [vmem:[#allocation2 + $0x78] sm:$0xff]  ;;  %548 = vadd.xlane.f32.xlu0 %v547_v3  ;;  %448 = vmatpush.bf16.msra.mxu0 %v798_v1  ;;  %v813_v7 = vld [vmem:[#allocation2 + $0xb0] sm:$0xff]  ;;  %v804_v10 = vld [vmem:[#allocation2 + $0x68] sm:$0xff]  ;;  %v877_v62 = vmov 0   ;;  %v878_v63 = vmov 15   ;;  %vm577_vm4 = vcmask 517120  }
   0x8   :  { %v814_v5 = vld [vmem:[#allocation2 + $0xb8] sm:$0xff]  ;;  %461 = vmatpush.bf16.msra.mxu1 %v806_v2  ;;  %v821_v11 = vld [vmem:[#allocation2 + $0xf0] sm:$0xff]  ;;  %v812_v12 = vld [vmem:[#allocation2 + $0xa8] sm:$0xff]  ;;  %845 = vset.pattern.permute.xlu1 %v877_v62  ;;  %vm590_vm5 = vcmask 523264  }
   0x9   :  { %474 = vmatpush.bf16.msra.mxu2 %v814_v5  ;;  %v822_v8 = vld [vmem:[#allocation2 + $0xf8] sm:$0xff]  ;;  %v795_v13 = vld [vmem:[#allocation2 + $0x20] sm:$0xff]  ;;  %v820_v15 = vld [vmem:[#allocation2 + $0xe8] sm:$0xff]  ;;  %844 = vset.pattern.permute.xlu0 %v878_v63 }
   0xa   :  { %487 = vmatpush.bf16.msra.mxu3 %v822_v8  ;;  %v803_v14 = vld [vmem:[#allocation2 + $0x60] sm:$0xff]  ;;  %v35_v17 = vld [vmem:[%s929_s1] sm:$0x7f]  ;;  %v793_v22 = vld [vmem:[#allocation2 + $0x10] sm:$0xff]  ;;  %846 = vset.pattern.permute.xlu2 %v877_v62 }
   0xb   :  { %449 = vmatpush.bf16.msra.mxu0 %v797_v4  ;;  %v811_v16 = vld [vmem:[#allocation2 + $0xa0] sm:$0xff]  ;;  %136 = vst [vmem:[#allocation1] ss:$9 sm:$0xff] %v35_v17  ;;  %v794_v18 = vld [vmem:[#allocation2 + $0x18] sm:$0xff]  ;;  %v801_v23 = vld [vmem:[#allocation2 + $0x50] sm:$0xff] }
   0xc   :  { %462 = vmatpush.bf16.msra.mxu1 %v805_v6  ;;  %v802_v19 = vld [vmem:[#allocation2 + $0x58] sm:$0xff]  ;;  %v819_v20 = vld [vmem:[#allocation2 + $0xe0] sm:$0xff]  ;;  %v809_v25 = vld [vmem:[#allocation2 + $0x90] sm:$0xff] }
   0xd   :  { %475 = vmatpush.bf16.msra.mxu2 %v813_v7  ;;  %v810_v21 = vld [vmem:[#allocation2 + $0x98] sm:$0xff]  ;;  %v133_v26 = vld [vmem:[#allocation2 + $0x180] sm:$0x3]  ;;  %v792_v27 = vld [vmem:[#allocation2 + $0x8] sm:$0xff] }
   0xe   :  { %488 = vmatpush.bf16.msra.mxu3 %v821_v11  ;;  %v818_v24 = vld [vmem:[#allocation2 + $0xd8] sm:$0xff]  ;;  %v800_v28 = vld [vmem:[#allocation2 + $0x48] sm:$0xff]  ;;  %v817_v29 = vld [vmem:[#allocation2 + $0xd0] sm:$0xff]  ;;  %v343_v30 = vunpack.c.l.b16 %v133_v26 }
   0xf   :  { %450 = vmatpush.bf16.msra.mxu0 %v796_v9  ;;  %v808_v31 = vld [vmem:[#allocation2 + $0x88] sm:$0xff]  ;;  %v791_v32 = vld [vmem:[#allocation2] sm:$0xff]  ;;  %v830_v33 = vld [vmem:[#allocation2 + $0x138] sm:$0xff] }
  0x10   :  { %463 = vmatpush.bf16.msra.mxu1 %v804_v10  ;;  %v799_v34 = vld [vmem:[#allocation2 + $0x40] sm:$0xff]  ;;  %v392_v35 = vpack.c.b16 %v343_v30, %v343_v30  ;;  %v838_v36 = vld [vmem:[#allocation2 + $0x178] sm:$0xff]  ;;  %v816_v38 = vld [vmem:[#allocation2 + $0xc8] sm:$0xff] }
  0x11   :  { %476 = vmatpush.bf16.msra.mxu2 %v812_v12  ;;  %v807_v37 = vld [vmem:[#allocation2 + $0x80] sm:$0xff]  ;;  %v829_v40 = vld [vmem:[#allocation2 + $0x130] sm:$0xff]  ;;  %v828_v46 = vld [vmem:[#allocation2 + $0x128] sm:$0xff] }
  0x12   :  { %489 = vmatpush.bf16.msra.mxu3 %v820_v15  ;;  %v137_v39 = vld [vmem:[#allocation1] sm:$0xff]  ;;  %v138_v41 = vld [vmem:[#allocation1 + $0x9] sm:$0xff]  ;;  %v446_v42 = vsel %vm444_vm1, %v392_v35, 0  ;;  %v837_v43 = vld [vmem:[#allocation2 + $0x170] sm:$0xff] }
  0x13   :  { %451 = vmatpush.bf16.msra.mxu0 %v795_v13  ;;  %v139_v44 = vld [vmem:[#allocation1 + $0x12] sm:$0xff]  ;;  %v815_v45 = vld [vmem:[#allocation2 + $0xc0] sm:$0xff]  ;;  %v140_v48 = vld [vmem:[#allocation1 + $0x1b] sm:$0xff] }
  0x14   :  { %464 = vmatpush.bf16.msra.mxu1 %v803_v14  ;;  %v836_v47 = vld [vmem:[#allocation2 + $0x168] sm:$0xff]  ;;  %v827_v49 = vld [vmem:[#allocation2 + $0x120] sm:$0xff]  ;;  %v826_v51 = vld [vmem:[#allocation2 + $0x118] sm:$0xff] }
  0x15   :  { %477 = vmatpush.bf16.msra.mxu2 %v811_v16  ;;  %v835_v50 = vld [vmem:[#allocation2 + $0x160] sm:$0xff]  ;;  %v834_v52 = vld [vmem:[#allocation2 + $0x158] sm:$0xff]  ;;  %v825_v53 = vld [vmem:[#allocation2 + $0x110] sm:$0xff] }
  0x16   :  { %490 = vmatpush.bf16.msra.mxu3 %v819_v20  ;;  %v833_v54 = vld [vmem:[#allocation2 + $0x150] sm:$0xff]  ;;  %v824_v56 = vld [vmem:[#allocation2 + $0x108] sm:$0xff]  ;;  %v823_v58 = vld [vmem:[#allocation2 + $0x100] sm:$0xff] }
  0x17   :  { %452 = vmatpush.bf16.msra.mxu0 %v794_v18  ;;  %v143_v55 = vld [vmem:[#allocation1 + $0x36] sm:$0xff]  ;;  %v831_v59 = vld [vmem:[#allocation2 + $0x140] sm:$0xff]  ;;  %v36_v7 = vld [vmem:[%s931_s3] sm:$0xff] }
  0x18   :  { %465 = vmatpush.bf16.msra.mxu1 %v802_v19  ;;  %v832_v57 = vld [vmem:[#allocation2 + $0x148] sm:$0xff]  ;;  %v141_v60 = vld [vmem:[#allocation1 + $0x24] sm:$0xff]  ;;  %v134_v9 = vperm.slane %v36_v7, 0 }
  0x19   :  { %478 = vmatpush.bf16.msra.mxu2 %v810_v21  ;;  %v142_v61 = vld [vmem:[#allocation1 + $0x2d] sm:$0xff] }
  0x1a   :  { %491 = vmatpush.bf16.msra.mxu3 %v818_v24  ;;  %v539_v24 = vlaneseq }
  0x1b   :  { %453 = vmatpush.bf16.msra.mxu0 %v793_v22 }
  0x1c   :  { %466 = vmatpush.bf16.msra.mxu1 %v801_v23 }
  0x1d   :  { %479 = vmatpush.bf16.msra.mxu2 %v809_v25 }
  0x1e   :  { %492 = vmatpush.bf16.msra.mxu3 %v817_v29 }
  0x1f   :  { %454 = vmatpush.bf16.msra.mxu0 %v792_v27  ;;  %v540_v27 = vand.u32 127, %v539_v24 }
  0x20   :  { %467 = vmatpush.bf16.msra.mxu1 %v800_v28  ;;  %v570_v28 = vperm.slane %v36_v7, 2 }
  0x21   :  { %480 = vmatpush.bf16.msra.mxu2 %v808_v31  ;;  %vm541_vm3 = vcmp.lt.s32.totalorder %v540_v27, 64 }
  0x22   :  { %493 = vmatpush.bf16.msra.mxu3 %v816_v38 }
  0x23   :  { %455 = vmatpush.bf16.msra.mxu0 %v791_v32  ;;  %v558_v32 = vperm.slane %v36_v7, 5 }
  0x24   :  { %468 = vmatpush.bf16.msra.mxu1 %v799_v34  ;;  %v565_v34 = vperm.slane %v36_v7, 6 }
  0x25   :  { %481 = vmatpush.bf16.msra.mxu2 %v807_v37 }
  0x26   :  { %456 = vmatmul.bf16.vlgmr.msra.gmra.mxu0 %v137_v39  ;;  %494 = vmatpush.bf16.msra.mxu3 %v815_v45 }
  0x27   :  { %500 = vmatpush.bf16.msrb.mxu0 %v830_v33  ;;  %469 = vmatmul.bf16.vlgmr.msra.gmra.mxu1 %v138_v41  ;;  %v556_v33 = vperm.slane %v36_v7, 4  ;;  %v568_v41 = vperm.slane %v36_v7, 1 }
  0x28   :  { %513 = vmatpush.bf16.msrb.mxu1 %v838_v36  ;;  %482 = vmatmul.bf16.vlgmr.msra.gmra.mxu2 %v139_v44 }
  0x29   :  { %533 = vmatpush.bf16.msrb.mxu2 %v446_v42  ;;  %495 = vmatmul.bf16.vlgmr.msra.gmra.mxu3 %v140_v48 }
  0x2b   :  { %501 = vmatpush.bf16.msrb.mxu0 %v829_v40 }
  0x2c   :  { %514 = vmatpush.bf16.msrb.mxu1 %v837_v43  ;;  %v575_v43 = vperm.slane %v36_v7, 3 }
  0x2f   :  { %502 = vmatpush.bf16.msrb.mxu0 %v828_v46 }
  0x30   :  { %515 = vmatpush.bf16.msrb.mxu1 %v836_v47  ;;  %v582_v47 = vperm.slane %v36_v7, 7 }
  0x33   :  { %503 = vmatpush.bf16.msrb.mxu0 %v827_v49 }
  0x34   :  { %516 = vmatpush.bf16.msrb.mxu1 %v835_v50 }
  0x37   :  { %504 = vmatpush.bf16.msrb.mxu0 %v826_v51 }
  0x38   :  { %517 = vmatpush.bf16.msrb.mxu1 %v834_v52  ;;  %790 = vmatmul.msk.bf16.vlgmr.msrb.gmra.mxu2 %vm441_vm2, %v143_v55 }
  0x3b   :  { %505 = vmatpush.bf16.msrb.mxu0 %v825_v53 }
  0x3c   :  { %518 = vmatpush.bf16.msrb.mxu1 %v833_v54 }
  0x3f   :  { %506 = vmatpush.bf16.msrb.mxu0 %v824_v56 }
  0x40   :  { %519 = vmatpush.bf16.msrb.mxu1 %v832_v57 }
  0x43   :  { %507 = vmatpush.bf16.msrb.mxu0 %v823_v58 }
  0x44   :  { %520 = vmatpush.bf16.msrb.mxu1 %v831_v59 }
  0x46   :  { %508 = vmatmul.bf16.vlgmr.msrb.gmra.mxu0 %v141_v60 }
  0x47   :  { %521 = vmatmul.bf16.vlgmr.msrb.gmra.mxu1 %v142_v61 }
  0x7a   :  { %v549_v1 = vpop.xlane.xlu0 %548 }
  0x7b   :  { %v550_v2 = vsub.f32 %v549_v1, %v910_v0  ;;  %v559_v37 = vmul.f32 %v558_v32, %v549_v1 }
  0x7d   :  { %562 = vperm.xlu1 %845, %v550_v2   ;;  %553 = vperm.xlu0 %844, %v550_v2  }
  0x85   :  { %847 = vset.pattern.permute.xlu0 %v877_v62 }
  0xa3   :  { %v457_v3 = vpop.f32.mrf.mxu0 }
  0xa4   :  { %v470_v4 = vpop.f32.mrf.mxu1  ;;  %v458_v11 = vadd.f32 %v457_v3, %v134_v9 }
  0xa6   :  { %v471_v13 = vadd.f32 %v470_v4, %v458_v11 }
  0xab   :  { %v483_v5 = vpop.f32.mrf.mxu2  ;;  %v459_v6 = vpop.f32.mrf.mxu0 }
  0xac   :  { %v472_v8 = vpop.f32.mrf.mxu1  ;;  %v496_v10 = vpop.f32.mrf.mxu3  ;;  %v484_v15 = vadd.f32 %v483_v5, %v471_v13 }
  0xae   :  { %v497_v16 = vadd.f32 %v496_v10, %v484_v15 }
  0xb3   :  { %v485_v12 = vpop.f32.mrf.mxu2 }
  0xb4   :  { %v498_v14 = vpop.f32.mrf.mxu3 }
  0xbb   :  { %v535_v0 = vpop.f32.mrf.mxu2 }
  0xc3   :  { %v509_v17 = vpop.f32.mrf.mxu0  ;;  %v537_v21 = vpop.f32.mrf.mxu2 }
  0xc4   :  { %v510_v18 = vadd.f32 %v509_v17, %v497_v16  ;;  %v522_v19 = vpop.f32.mrf.mxu1 }
  0xc6   :  { %v523_v20 = vadd.f32 %v522_v19, %v510_v18 }
  0xc8   :  { %v536_v22 = vadd.f32 %v535_v0, %v523_v20 }
  0xca   :  { %v542_v25 = vmax.f32 %v536_v22, 0.0 }
  0xcb   :  { %v511_v23 = vpop.f32.mrf.mxu0 }
  0xcc   :  { %v524_v26 = vpop.f32.mrf.mxu1  ;;  %v545_v29 = vsel %vm541_vm3, %v542_v25, %v536_v22 }
  0xcd   :  { %v571_v30 = vmul.f32 %v570_v28, %v545_v29  ;;  %584 = vst [vmem:[%s932_s4] sm:$0x3] %v545_v29 }
  0xcf   :  { %v572_v31 = vsel %vm444_vm1, %v571_v30, 0.0 }
  0xd0   :  { %573 = vadd.xlane.f32.xlu1 %v572_v31 }
  0xef   :  { %v563_v35 = vpop.permute.xlu1 %562  ;;  %v554_v36 = vpop.permute.xlu0 %553 }
  0xf0   :  { %v557_v38 = vmul.f32 %v556_v33, %v554_v36  ;;  %v566_v39 = vmul.f32 %v565_v34, %v563_v35 }
  0xf2   :  { %v560_v40 = vadd.f32 %v559_v37, %v557_v38 }
  0xf4   :  { %v567_v42 = vadd.f32 %v566_v39, %v560_v40 }
  0xf6   :  { %v569_v44 = vadd.f32 %v568_v41, %v567_v42 }
  0xf8   :  { %v576_v45 = vmul.f32 %v575_v43, %v569_v44 }
  0xfa   :  { %v578_v46 = vsel %vm577_vm4, %v576_v45, 0.0 }
  0xfb   :  { %579 = vadd.xlane.f32.xlu2 %v578_v46 }
 0x143   :  { %v574_v48 = vpop.xlane.xlu1 %573 }
 0x16e   :  { %v580_v49 = vpop.xlane.xlu2 %579 }
 0x16f   :  { %v581_v50 = vadd.f32 %v580_v49, %v574_v48 }
 0x171   :  { %v583_v51 = vadd.f32 %v582_v47, %v581_v50 }
 0x173   :  { %587 = vperm.xlu2 %846, %v583_v51  }
 0x1cd   :  { %v588_v52 = vpop.permute.xlu2 %587 }
 0x1ce   :  { %v591_v53 = vsel %vm590_vm5, %v569_v44, %v588_v52 }
 0x1cf   :  { %592 = vst [vmem:[%s932_s4 + $0x2] sm:$0x3] %v591_v53 }
 0x1d0   :  { %597 = vsyncpa [#allocation3], 1 }

</bundles_post_ra>
